<compile_context>
chip_gen: v5e
topology: v5e:2x2
jax: 0.10.0
libtpu: 0.0.40
codegen_flags: <defaults>
</compile_context>

<pallas_src>
import functools
import math

import jax
import jax.numpy as jnp
from jax.experimental import pallas as pl
from jax.experimental.pallas import tpu as pltpu


def _sdpa_kernel(q_ref, k_ref, v_ref, mask_ref, ctx_ref, attn_ref, *,
                 scale, fold_scale):
    # Block shapes:
    #   q_ref    : (HB, TQ, D)
    #   k_ref    : (HB, S,  D)   resident across q-tiles (index_map ignores qi)
    #   v_ref    : (HB, S,  D)   resident across q-tiles
    #   mask_ref : (HBm, TQ, S)  bool, True == masked; HBm == 1 when the mask
    #                            is shared across (batch, head) and broadcasts
    #   ctx_ref  : (HB, TQ, D)
    #   attn_ref : (HB, TQ, S)
    q = q_ref[...]
    k = k_ref[...]
    v = v_ref[...]
    mask = mask_ref[...]

    if fold_scale:
        # f32 inputs: fold 1/sqrt(d_k) into Q (S*D multiplies instead of S*S).
        q = q * jnp.asarray(scale, dtype=q.dtype)

    # Contract the last dims of Q and K directly ("NT" contraction) -- no
    # explicit K transpose; f32 accumulation on the MXU.
    scores = jnp.einsum("bqd,bkd->bqk", q, k, preferred_element_type=jnp.float32)

    if not fold_scale:
        # Low-precision inputs: scale the f32 scores post-matmul so numerics
        # match the reference's post-matmul f32 scaling.
        scores = scores * jnp.float32(scale)

    # masked_fill_(attn_mask, -1e9); bool mask broadcasts over the head batch.
    scores = jnp.where(mask, jnp.float32(-1.0e9), scores)

    # Numerically stabilized softmax over the last axis (f32 throughout).
    m = jnp.max(scores, axis=-1, keepdims=True)
    e = jnp.exp(scores - m)
    denom = jnp.sum(e, axis=-1, keepdims=True)
    # EUP approx reciprocal + one Newton-Raphson step -> ~full f32 precision,
    # keeps the divide off the VPU.
    inv = pl.reciprocal(denom, approx=True)
    inv = inv * (jnp.float32(2.0) - denom * inv)
    attn = e * inv

    # dropout_rate = 0.0 -> dropout is the identity.

    # context = attn @ V (batched over the head axis, f32 accumulation).
    ctx = jnp.einsum("bqk,bkd->bqd", attn.astype(v.dtype), v,
                     preferred_element_type=jnp.float32)

    attn_ref[...] = attn.astype(attn_ref.dtype)
    ctx_ref[...] = ctx.astype(ctx_ref.dtype)


def _vmem_capacity_bytes():
    try:
        return int(pltpu.get_tpu_info().vmem_capacity_bytes)
    except Exception:
        return 64 << 20  # conservative default: v7x per-TensorCore VMEM


def _divisors(n):
    return [d for d in range(1, n + 1) if n % d == 0]


def _step_bytes(hb, tq, S, D, in_itemsize, out_itemsize, mask_shared):
    """Double-buffered VMEM bytes for one grid step's blocks."""
    hbm_mask = 1 if mask_shared else hb
    return 2 * (
        hb * tq * D * in_itemsize        # Q block
        + hb * tq * D * out_itemsize     # ctx block
        + hbm_mask * tq * S * 1          # bool mask block (1 byte / elem)
        + hb * tq * S * out_itemsize     # attn block
        + 2 * hb * S * D * in_itemsize   # K + V (resident across q-tiles)
    )


def _choose_tiles(BH, S, D, in_itemsize, out_itemsize, mask_shared, budget):
    def fits(hb, tq):
        return _step_bytes(hb, tq, S, D, in_itemsize, out_itemsize,
                           mask_shared) <= budget

    # Query tile: largest divisor of S that is a multiple of 8, <= 512, and
    # fits the VMEM budget at HB=1; else fall back to the smallest legal tile
    # (or the full sequence when S has no multiple-of-8 divisor).
    tq_candidates = [d for d in _divisors(S) if d % 8 == 0 and d <= 512]
    tq = None
    for d in sorted(tq_candidates, reverse=True):
        if fits(1, d):
            tq = d
            break
    if tq is None:
        tq = tq_candidates[0] if tq_candidates else S

    # Heads per grid step: as large as the budget allows, but keep >= 2 grid
    # steps when possible so the v7x megacore (2 TCs) and the software
    # pipeline both have work to overlap.
    hb = 1
    for d in sorted(_divisors(BH), reverse=True):
        if not fits(d, tq):
            continue
        if d == 1 or (BH // d) * (S // tq) >= 2:
            hb = d
            break
    return hb, tq


def scaled_dot_product_attention(Q, K, V, attn_mask):
    """Q, K, V: [B, H, S, D]; attn_mask: bool, broadcastable to [B, H, S, S]
    (True = masked).  Returns (context [B,H,S,D], attn [B,H,S,S]) in Q.dtype."""
    B, H, S, D = Q.shape
    BH = B * H
    in_itemsize = jnp.dtype(Q.dtype).itemsize
    out_itemsize = in_itemsize  # ctx / attn returned in Q.dtype

    q = Q.reshape(BH, S, D)
    k = K.reshape(BH, S, D)
    v = V.reshape(BH, S, D)

    # Keep the mask in its native bool dtype (1 byte/elem in HBM) -- no extra
    # bool->int8 conversion pass over the largest S^2 stream.
    mask = jnp.asarray(attn_mask, dtype=jnp.bool_)
    if mask.ndim < 2:
        mask = jnp.broadcast_to(mask, (S, S))
    elif mask.shape[-2:] != (S, S):
        mask = jnp.broadcast_to(mask, mask.shape[:-2] + (S, S))
    lead = 1
    for n in mask.shape[:-2]:
        lead *= n
    mask_shared = (lead == 1)
    if mask_shared:
        # Shared mask (causal / global padding): a single [1, S, S] HBM copy,
        # re-read per q-tile -> BH x less mask traffic.
        mask = mask.reshape(1, S, S)
    else:
        # Genuinely per-(batch, head) mask: full read is unavoidable.
        mask = jnp.broadcast_to(mask, (B, H, S, S)).reshape(BH, S, S)

    cap = _vmem_capacity_bytes()
    # Budget the total double-buffered block footprint at ~55% of physical
    # VMEM (headroom for Mosaic internal scratch / semaphores):
    #   v5e/v6e (128 MiB) -> ~70 MiB,  v7x (64 MiB / TC) -> ~35 MiB.
    budget = max(12 << 20, int(cap * 0.55))
    HB, TQ = _choose_tiles(BH, S, D, in_itemsize, out_itemsize, mask_shared,
                           budget)

    grid = (BH // HB, S // TQ)

    q_spec = pl.BlockSpec((HB, TQ, D), lambda i, qi: (i, qi, 0))
    kv_spec = pl.BlockSpec((HB, S, D), lambda i, qi: (i, 0, 0))  # resident over q-tiles
    if mask_shared:
        mask_spec = pl.BlockSpec((1, TQ, S), lambda i, qi: (0, qi, 0))
    else:
        mask_spec = pl.BlockSpec((HB, TQ, S), lambda i, qi: (i, qi, 0))
    ctx_spec = pl.BlockSpec((HB, TQ, D), lambda i, qi: (i, qi, 0))
    attn_spec = pl.BlockSpec((HB, TQ, S), lambda i, qi: (i, qi, 0))

    # Scoped VMEM limit: always at least the real block footprint + headroom,
    # clamped below physical capacity (generation-aware, never under-sized).
    footprint = _step_bytes(HB, TQ, S, D, in_itemsize, out_itemsize, mask_shared)
    vmem_limit = int(min(max(footprint + (8 << 20), 32 << 20), int(cap * 0.95)))

    kernel = functools.partial(
        _sdpa_kernel,
        scale=1.0 / math.sqrt(D),
        fold_scale=(jnp.dtype(Q.dtype) == jnp.float32),
    )

    ctx, attn = pl.pallas_call(
        kernel,
        out_shape=(
            jax.ShapeDtypeStruct((BH, S, D), Q.dtype),
            jax.ShapeDtypeStruct((BH, S, S), Q.dtype),
        ),
        grid_spec=pltpu.PrefetchScalarGridSpec(
            num_scalar_prefetch=0,
            grid=grid,
            in_specs=[q_spec, kv_spec, kv_spec, mask_spec],
            out_specs=[ctx_spec, attn_spec],
        ),
        compiler_params=pltpu.CompilerParams(
            # Both grid axes write disjoint output blocks and carry no state
            # across steps -> fully parallel (lets the v7x megacore shard
            # either axis; no-op on single-TC v5e/v6e).
            dimension_semantics=("parallel", "parallel"),
            vmem_limit_bytes=vmem_limit,
        ),
    )(q, k, v, mask)

    return ctx.reshape(B, H, S, D), attn.reshape(B, H, S, S)


def _reference(Q, K, V, attn_mask):
    d_k = K.shape[-1]
    scores = jnp.einsum("bhqd,bhkd->bhqk", Q, K) / jnp.sqrt(jnp.float32(d_k))
    scores = jnp.where(attn_mask, -1.0e9, scores)
    attn = jax.nn.softmax(scores, axis=-1)
    ctx = jnp.einsum("bhqk,bhkd->bhqd", attn, V)
    return ctx, attn


if __name__ == "__main__":
    key = jax.random.PRNGKey(0)
    B, H, S, D = 2, 2, 8, 32

    kq, kk, kv, km = jax.random.split(key, 4)
    Q = jax.random.normal(kq, (B, H, S, D), dtype=jnp.float32)
    K = jax.random.normal(kk, (B, H, S, D), dtype=jnp.float32)
    V = jax.random.normal(kv, (B, H, S, D), dtype=jnp.float32)

    # 1) Shared causal mask ([1, 1, S, S]) -- exercises the broadcast fast
    #    path (one HBM copy of the mask, re-read per q-tile).
    causal = jnp.triu(jnp.ones((S, S), dtype=bool), k=1)[None, None]
    ctx, attn = scaled_dot_product_attention(Q, K, V, causal)
    jax.block_until_ready((ctx, attn))
    ctx_ref, attn_ref = _reference(Q, K, V, causal)
    assert jnp.allclose(ctx, ctx_ref, atol=1e-4, rtol=1e-4), "context mismatch (shared mask)"
    assert jnp.allclose(attn, attn_ref, atol=1e-5, rtol=1e-5), "attn mismatch (shared mask)"

    # 2) Full per-(batch, head) boolean mask -- general path.
    full_mask = jax.random.bernoulli(km, p=0.25, shape=(B, H, S, S))
    ctx2, attn2 = scaled_dot_product_attention(Q, K, V, full_mask)
    jax.block_until_ready((ctx2, attn2))
    ctx2_ref, attn2_ref = _reference(Q, K, V, full_mask)
    assert jnp.allclose(ctx2, ctx2_ref, atol=1e-4, rtol=1e-4), "context mismatch (full mask)"
    assert jnp.allclose(attn2, attn2_ref, atol=1e-5, rtol=1e-5), "attn mismatch (full mask)"

    print("KERNEL_OK")
</pallas_src>

<mosaic_0001>
module attributes {stable_mosaic.version = 11 : i64} {
  func.func @_sdpa_kernel(%arg0: i32, %arg1: i32, %arg2: memref<2x8x32xf32, #tpu.memory_space<vmem>>, %arg3: memref<2x8x32xf32, #tpu.memory_space<vmem>>, %arg4: memref<2x8x32xf32, #tpu.memory_space<vmem>>, %arg5: memref<1x8x8xi32, #tpu.memory_space<vmem>>, %arg6: memref<2x8x32xf32, #tpu.memory_space<vmem>>, %arg7: memref<2x8x8xf32, #tpu.memory_space<vmem>>) attributes {dimension_semantics = [#tpu.dimension_semantics<parallel>, #tpu.dimension_semantics<parallel>], iteration_bounds = array<i64: 2, 1>, scalar_prefetch = 0 : i64, scratch_operands = 0 : i64, tpu.core_type = #tpu.core_type<tc>, window_params = [{transform_indices = @transform_0, window_bounds = array<i64: 2, 8, 32>}, {transform_indices = @transform_1, window_bounds = array<i64: 2, 8, 32>}, {transform_indices = @transform_2, window_bounds = array<i64: 2, 8, 32>}, {transform_indices = @transform_3, window_bounds = array<i64: 1, 8, 8>}, {transform_indices = @transform_4, window_bounds = array<i64: 2, 8, 32>}, {transform_indices = @transform_5, window_bounds = array<i64: 2, 8, 8>}]} {
    %c0 = arith.constant 0 : index
    %c0_0 = arith.constant 0 : index
    %c0_1 = arith.constant 0 : index
    %0 = vector.load %arg2[%c0, %c0_0, %c0_1] : memref<2x8x32xf32, #tpu.memory_space<vmem>>, vector<2x8x32xf32>
    %c0_2 = arith.constant 0 : index
    %c0_3 = arith.constant 0 : index
    %c0_4 = arith.constant 0 : index
    %1 = vector.load %arg3[%c0_2, %c0_3, %c0_4] : memref<2x8x32xf32, #tpu.memory_space<vmem>>, vector<2x8x32xf32>
    %c0_5 = arith.constant 0 : index
    %c0_6 = arith.constant 0 : index
    %c0_7 = arith.constant 0 : index
    %2 = vector.load %arg4[%c0_5, %c0_6, %c0_7] : memref<2x8x32xf32, #tpu.memory_space<vmem>>, vector<2x8x32xf32>
    %c0_8 = arith.constant 0 : index
    %c0_9 = arith.constant 0 : index
    %c0_10 = arith.constant 0 : index
    %3 = vector.load %arg5[%c0_8, %c0_9, %c0_10] : memref<1x8x8xi32, #tpu.memory_space<vmem>>, vector<1x8x8xi32>
    %cst = arith.constant dense<0> : vector<1x8x8xi32>
    %4 = arith.cmpi ne, %3, %cst : vector<1x8x8xi32>
    %cst_11 = arith.constant 0.176776692 : f32
    %5 = vector.broadcast %cst_11 : f32 to vector<2x8x32xf32>
    %6 = arith.mulf %0, %5 : vector<2x8x32xf32>
    "tpu.trace_start"() <{level = 10 : i32, message = "bqd,bkd->bqk"}> : () -> ()
    %cst_12 = arith.constant dense<0.000000e+00> : vector<2x8x8xf32>
    %7 = tpu.matmul %6, %1, %cst_12 {dimension_numbers = #tpu.dot_dimension_numbers<[2], [2], [1], [1], [0, 0, 0, 1, 1, 1], [0], [0]>} : vector<2x8x32xf32>, vector<2x8x32xf32>, vector<2x8x8xf32> -> vector<2x8x8xf32>
    %cst_13 = arith.constant -1.000000e+09 : f32
    "tpu.trace_stop"() : () -> ()
    %8 = vector.shape_cast %4 : vector<1x8x8xi1> to vector<1x8x8xi1>
    %9 = vector.broadcast %8 : vector<1x8x8xi1> to vector<2x8x8xi1>
    %10 = vector.broadcast %cst_13 : f32 to vector<2x8x8xf32>
    %11 = arith.select %9, %10, %7 : vector<2x8x8xi1>, vector<2x8x8xf32>
    %cst_14 = arith.constant dense<0xFF800000> : vector<2x8xf32>
    %12 = vector.multi_reduction <maximumf>, %11, %cst_14 [2] : vector<2x8x8xf32> to vector<2x8xf32>
    %13 = vector.shape_cast %12 : vector<2x8xf32> to vector<2x8x1xf32>
    %14 = vector.broadcast %13 : vector<2x8x1xf32> to vector<2x8x8xf32>
    %15 = arith.subf %11, %14 : vector<2x8x8xf32>
    %16 = math.exp %15 : vector<2x8x8xf32>
    %cst_15 = arith.constant dense<0.000000e+00> : vector<2x8xf32>
    %17 = vector.multi_reduction <add>, %16, %cst_15 [2] : vector<2x8x8xf32> to vector<2x8xf32>
    %18 = vector.shape_cast %17 : vector<2x8xf32> to vector<2x8x1xf32>
    %19 = tpu.reciprocal %18 {approx = true} : vector<2x8x1xf32> -> vector<2x8x1xf32>
    %20 = arith.mulf %18, %19 : vector<2x8x1xf32>
    %cst_16 = arith.constant 2.000000e+00 : f32
    %21 = vector.broadcast %cst_16 : f32 to vector<2x8x1xf32>
    %22 = arith.subf %21, %20 : vector<2x8x1xf32>
    %23 = arith.mulf %19, %22 : vector<2x8x1xf32>
    %24 = vector.broadcast %23 : vector<2x8x1xf32> to vector<2x8x8xf32>
    %25 = arith.mulf %16, %24 : vector<2x8x8xf32>
    "tpu.trace_start"() <{level = 10 : i32, message = "bqk,bkd->bqd"}> : () -> ()
    %cst_17 = arith.constant dense<0.000000e+00> : vector<2x8x32xf32>
    %26 = tpu.matmul %25, %2, %cst_17 {dimension_numbers = #tpu.dot_dimension_numbers<[2], [1], [1], [2], [0, 0, 0, 1, 1, 2], [0], [0]>} : vector<2x8x8xf32>, vector<2x8x32xf32>, vector<2x8x32xf32> -> vector<2x8x32xf32>
    "tpu.trace_stop"() : () -> ()
    %c0_18 = arith.constant 0 : index
    %c0_19 = arith.constant 0 : index
    %c0_20 = arith.constant 0 : index
    %27 = vector.load %arg7[%c0_18, %c0_19, %c0_20] : memref<2x8x8xf32, #tpu.memory_space<vmem>>, vector<2x8x8xf32>
    tpu.vector_store %arg7[%c0_18, %c0_19, %c0_20], %25 {strides = array<i32>} : memref<2x8x8xf32, #tpu.memory_space<vmem>>, vector<2x8x8xf32>,
    %c0_21 = arith.constant 0 : index
    %c0_22 = arith.constant 0 : index
    %c0_23 = arith.constant 0 : index
    %28 = vector.load %arg6[%c0_21, %c0_22, %c0_23] : memref<2x8x32xf32, #tpu.memory_space<vmem>>, vector<2x8x32xf32>
    tpu.vector_store %arg6[%c0_21, %c0_22, %c0_23], %26 {strides = array<i32>} : memref<2x8x32xf32, #tpu.memory_space<vmem>>, vector<2x8x32xf32>,
    return
  }
  func.func @transform_0(%arg0: i32, %arg1: i32) -> (i32, i32, i32) {
    %c0_i32 = arith.constant 0 : i32
    %c0_i32_0 = arith.constant 0 : i32
    return %arg0, %arg1, %c0_i32 : i32, i32, i32
  }
  func.func @transform_1(%arg0: i32, %arg1: i32) -> (i32, i32, i32) {
    %c0_i32 = arith.constant 0 : i32
    %c0_i32_0 = arith.constant 0 : i32
    %c0_i32_1 = arith.constant 0 : i32
    return %arg0, %c0_i32, %c0_i32_0 : i32, i32, i32
  }
  func.func @transform_2(%arg0: i32, %arg1: i32) -> (i32, i32, i32) {
    %c0_i32 = arith.constant 0 : i32
    %c0_i32_0 = arith.constant 0 : i32
    %c0_i32_1 = arith.constant 0 : i32
    return %arg0, %c0_i32, %c0_i32_0 : i32, i32, i32
  }
  func.func @transform_3(%arg0: i32, %arg1: i32) -> (i32, i32, i32) {
    %c0_i32 = arith.constant 0 : i32
    %c0_i32_0 = arith.constant 0 : i32
    %c0_i32_1 = arith.constant 0 : i32
    return %c0_i32, %arg1, %c0_i32_0 : i32, i32, i32
  }
  func.func @transform_4(%arg0: i32, %arg1: i32) -> (i32, i32, i32) {
    %c0_i32 = arith.constant 0 : i32
    %c0_i32_0 = arith.constant 0 : i32
    return %arg0, %arg1, %c0_i32 : i32, i32, i32
  }
  func.func @transform_5(%arg0: i32, %arg1: i32) -> (i32, i32, i32) {
    %c0_i32 = arith.constant 0 : i32
    %c0_i32_0 = arith.constant 0 : i32
    return %arg0, %arg1, %c0_i32 : i32, i32, i32
  }
}

</mosaic_0001>

<bundles_post_ra>
// kernel: tpu_custom_call.1
= control target key start
LH: loop header
LB: loop body
LE: loop exit
PB: predicated region body
PF: predicated region fallthrough
CT: control target
= control target key end

     0   :  { %s1315_s0 = inlined_call_operand.hbm [shape: f32[4,8,32], index: 0, kind: input, shape index: {}]   ;;  %s1316_s1 = inlined_call_operand.hbm [shape: f32[4,8,32], index: 1, kind: input, shape index: {}]   ;;  %s1317_s2 = inlined_call_operand.hbm [shape: f32[4,8,32], index: 2, kind: input, shape index: {}]   ;;  %s1318_s3 = inlined_call_operand.vmem [shape: s32[1,8,8], index: 3, kind: input, shape index: {}]   ;;  %s1319_s4 = inlined_call_operand.hbm [shape: f32[4,8,32], index: 4, kind: output, shape index: {0}]   ;;  %s1320_s5 = inlined_call_operand.hbm [shape: f32[4,8,8], index: 5, kind: output, shape index: {1}]  }
   0x1   :  { %1328 = sst [smem:[#allocation22_spill]] %s1316_s1 }
   0x2   :  { %11 = vsyncpa [#allocation3], 0 }
   0x3   :  { %13 = vsyncpa [#allocation3 + $0x1], 0 }
   0x4   :  { %14 = vsyncpa [#allocation6], 0 }
   0x5   :  { %16 = vsyncpa [#allocation6 + $0x1], 0 }
   0x6   :  { %17 = vsyncpa [#allocation4], 0 }
   0x7   :  { %19 = vsyncpa [#allocation4 + $0x1], 0 }
   0x8   :  { %20 = vsyncpa [#allocation10], 0 }
   0x9   :  { %22 = vsyncpa [#allocation10 + $0x1], 0  ;;  %s1114_s18 = smov 0   ;;  %s1116_s19 = smov 0  }
   0xa   :  { %s1118_s20 = smov 0   ;;  %s1120_s21 = smov 0  }
   0xb   :  { %s1122_s22 = smov 0   ;;  %s1124_s23 = smov 0  }
   0xc LB: > { %1329 = sst [smem:[#allocation15_spill]] %s1058_s18  ;;  %s1145_s24 = sadd.s32 4294967295, %s1078_s23   ;;  %s1078_s23 = sphi %s1124_s23, %s28_s23   ;;  %s1074_s22 = sphi %s1122_s22, %s1349_s22   ;;  %s1070_s21 = sphi %s1120_s21, %s1348_s21   ;;  %s1066_s20 = sphi %s1118_s20, %s1347_s20   ;;  %s1062_s19 = sphi %s1116_s19, %s1351_s19   ;;  %s1058_s18 = sphi %s1114_s18, %s1350_s18  }
   0xd   : > { %1330 = sst [smem:[#allocation16_spill]] %s1066_s20  ;;  %s743_s25 = sadd.s32 4294967294, %s1078_s23  }
   0xe   : > { %1331 = sst [smem:[#allocation17_spill]] %s1074_s22  ;;  %s40_s26 = sadd.s32 1, %s1074_s22 }
   0xf   : > { %1332 = sst [smem:[#allocation18_spill]] %s1078_s23  ;;  %s49_s27 = sadd.s32 1, %s1066_s20 }
  0x10   : > { %p42_p0 = scmp.ge.s32.totalorder %s40_s26, 2  ;;  %p56_p1 = scmp.ne.s32.totalorder %s1066_s20, %s1062_s19 }
  0x11   : > { %p57_p2 = scmp.eq.s32.totalorder %s1078_s23, 0  ;;  %p62_p3 = scmp.ne.s32.totalorder %s1062_s19, %s1058_s18 }
  0x12   : > { %s1353_s26 = smov (%p42_p0, %s40_s26), 0  ;;  %p63_p5 = scmp.eq.s32.totalorder %s1145_s24, 0 }
  0x13   : > { %1333 = sst [smem:[#allocation19_spill]] %s1353_s26  ;;  %p1157_p4 = por %p57_p2, %p56_p1 }
  0x14   : > { %s44_s29 = ssub.s32 %s1074_s22, %s1353_s26  ;;  %p166_p6 = scmp.eq.s32.totalorder %s1145_s24, 1 }
  0x15   : > { %p47_p7 = scmp.eq.s32.totalorder %s44_s29, 0  ;;  %p1165_p8 = por %p63_p5, %p62_p3 }
  0x16   : > { %p1169_p9 = por %p166_p6, %p56_p1  ;;  %p172_p10 = scmp.eq.s32.totalorder %s743_s25, 1 }
  0x17   : > { %s1174_s7 = scalar_select %p47_p7, %s1066_s20, %s49_s27  }
  0x18   : > { %p1176_p11 = por %p172_p10, %p62_p3  ;;  %p746_p12 = scmp.ge.s32.totalorder %s1078_s23, 2 }
  0x19   : > { %1337 = sst [smem:[#allocation20_spill]] %s1174_s7  ;;  %p808_p13 = scmp.lt.s32.totalorder %s1078_s23, 2 }
  0x1a   : > { %s1338_s8 = scalar_select %p1176_p11, 1, 0 }
  0x1b   : > { %s227_s9 = sand.u32 1, %s1066_s20   ;;  %s776_s11 = sshll.u32 %s1074_s22, 4 }
  0x1c   : > { %1339 = sst [smem:[#allocation21_spill]] %s1338_s8  ;;  %s1183_s10 = sshll.u32 %s227_s9, 4 }
  0x1d   : > { %p1188_p0 = pnand %p808_p13, %p1157_p4  ;;  %s250_s13 = sand.u32 1, %s1078_s23  }
  0x1e   : > { %s1341_s1 = sld [smem:[#allocation22_spill]]  ;;  %s254_s25 = scalar_lea.vmem [#allocation5], %s1183_s10 }
  0x1f   : > { %s262_s27 = sshll.u32 %s254_s25, 4  ;;  %s251_s29 = scalar_lea.sflag [#allocation6], %s250_s13  ;;  %s263_s27 = int_to_ptr.vmem [resolvable:$true] %s262_s27 }
  0x20   : > { %s1080_s26 = smov 128   ;;  %s1081_s28 = smov 8  }
  0x21   : > { %p756_p1 = scmp.ge.s32.totalorder %s1078_s23, 1  ;;  %p292_p2 = scmp.lt.s32.totalorder %s1078_s23, 3 }
  0x22   : > { %s228_s13 = scalar_lea.sflag [#allocation3], %s227_s9  ;;  %s281_s20 = scalar_lea.hbm %s1317_s2, %s776_s11 }
  0x23   : > { %p1201_p3 = pnand %p756_p1, %p292_p2  ;;  %s282_s23 = sshll.u32 %s281_s20, 4  ;;  %s283_s23 = int_to_ptr.hbm [resolvable:$true] %s282_s23 }
  0x24   : > { %s259_s16 = scalar_lea.hbm %s1341_s1, %s776_s11  ;;  %s231_s1 = scalar_lea.vmem [#allocation2], %s1183_s10 }
  0x25   : > { %s260_s17 = sshll.u32 %s259_s16, 4  ;;  %s237_s16 = scalar_lea.hbm %s1315_s0, %s776_s11  ;;  %s261_s17 = int_to_ptr.hbm [resolvable:$true] %s260_s17 }
  0x26   : > { %797 = dma.hbm_to_vmem [thread:$0]  (!%p1188_p0), %s261_s17, 256, %s263_s27, %s251_s29, %s1080_s26, %s1080_s26, %s1081_s28  }
  0x27   : > { %s238_s25 = sshll.u32 %s237_s16, 4  ;;  %s240_s7 = sshll.u32 %s231_s1, 4  ;;  %s239_s25 = int_to_ptr.hbm [resolvable:$true] %s238_s25  ;;  %s241_s7 = int_to_ptr.vmem [resolvable:$true] %s240_s7 }
  0x28   : > { %794 = dma.hbm_to_vmem [thread:$0]  (!%p1188_p0), %s239_s25, 256, %s241_s7, %s228_s13, %s1080_s26, %s1080_s26, %s1081_s28  }
  0x29   : > { %s276_s8 = scalar_lea.vmem [#allocation7], %s1183_s10  ;;  %296 = sbr.rel (%p1201_p3) target bundleno = 584 (0x248), region = 36 }
  0x2a   : > { %s284_s18 = sshll.u32 %s276_s8, 4  ;;  %s1220_s1 = sand.u32 (!%p1201_p3), 1, %s1062_s19   ;;  %s285_s18 = int_to_ptr.vmem [resolvable:$true] %s284_s18 }
  0x2b   : > { %800 = dma.hbm_to_vmem [thread:$0]  (!%p1188_p0), %s283_s23, 256, %s285_s18, %s251_s29, %s1080_s26, %s1080_s26, %s1081_s28  }
  0x2c   : > { %s1223_s7 = sshll.u32 (!%p1201_p3), %s1220_s1, 4  ;;  %s299_s9 = scalar_lea.sflag (!%p1201_p3), [#allocation3], %s1220_s1 }
  0x2d   : > { %s302_s20 = scalar_lea.vmem (!%p1201_p3), [#allocation2], %s1223_s7 }
  0x2e   : > { %1041 = dma.done.wait (%p1165_p8), %s299_s9, 256  }
  0x2f   : > { %1043 = vsyncadd (%p1165_p8), %s299_s9, 4294967040  ;;  %s308_s18 = sand.u32 1, %s1145_s24   ;;  %s312_s23 = scalar_lea.vmem [#allocation5], %s1223_s7 }
  0x30   : > { %s309_s22 = scalar_lea.sflag [#allocation6], %s308_s18 }
  0x31   : > { %1045 = dma.done.wait (%p1165_p8), %s309_s22, 512  }
  0x32   : > { %1047 = vsyncadd (%p1165_p8), %s309_s22, 4294966784  ;;  %vm388_vm0 = vcmask 261120   ;;  %v380_v0 = vld [vmem:[%s312_s23] sm:$0xff]  ;;  %v381_v2 = vld [vmem:[%s312_s23 + $0x8] sm:$0xff]  ;;  %vm445_vm2 = vcmask 64512   ;;  %s322_s30 = scalar_lea.vmem [#allocation7], %s1223_s7 }
  0x33   : > { %v378_v1 = vld [vmem:[%s302_s20] sm:$0xff]  ;;  %762 = vmatpush.xpose.msk.msra.mxu0 %vm388_vm0, %v380_v0  ;;  %764 = vmatpush.xpose.msk.msra.mxu1 %vm388_vm0, %v381_v2  ;;  %v379_v4 = vld [vmem:[%s302_s20 + $0x8] sm:$0xff]  ;;  %s368_s8 = scalar_lea.vmem [#allocation9], %s1223_s7  ;;  %s779_s10 = sshll.u32 %s1070_s21, 4 }
  0x34   : > { %v386_v3 = vmul.f32 0.17677669, %v378_v1  ;;  %v387_v5 = vmul.f32 0.17677669, %v379_v4  ;;  %v384_v6 = vld [vmem:[%s1318_s3] sm:$0xff]  ;;  %v383_v24 = vld [vmem:[%s322_s30 + $0x8] sm:$0xff]  ;;  %s560_s28 = scalar_lea.hbm %s1320_s5, %s779_s10 }
  0x35   : > { %vm385_vm1 = vcmp.ne.s32.totalorder %v384_v6, 0  ;;  %v382_v23 = vld [vmem:[%s322_s30] sm:$0xff]  ;;  %515 = vmatpush.msra.mxu3 %v383_v24  ;;  %s561_s11 = sshll.u32 %s368_s8, 4  ;;  %s563_s14 = sshll.u32 %s560_s28, 4  ;;  %s562_s11 = int_to_ptr.vmem [resolvable:$true] %s561_s11  ;;  %s564_s14 = int_to_ptr.hbm [resolvable:$true] %s563_s14 }
  0x36   : > { %763 = vmatmul.msk.f32.vlgmr.msra.gmra.mxu0 %vm388_vm0, %v386_v3  ;;  %765 = vmatmul.msk.f32.vlgmr.msra.gmra.mxu1 %vm388_vm0, %v387_v5  ;;  %s530_s15 = scalar_lea.sflag [#allocation10], %s1220_s1  ;;  %s974_s16 = sshra.s32 %s564_s14, 4  ;;  %s975_s16 = int_to_ptr.hbm [resolvable:$true] %s974_s16 }
  0x37   : > { %492 = vmatpush.msra.mxu2 %v382_v23  ;;  %s976_s25 = scalar_lea.hbm %s975_s16, 16  ;;  %s980_s21 = scalar_lea.hbm %s1320_s5, 32 }
  0x38   : > { %p977_p4 = scmp.ne.s32.totalorder %s975_s16, %s976_s25  ;;  %p981_p7 = scmp.lt.s32.totalorder %s975_s16, %s1320_s5 }
  0x39   : > { %p982_p8 = scmp.lt.s32.totalorder %s980_s21, %s976_s25 }
  0x3a   : > { %p978_p5 = pnand %p977_p4, %p1169_p9 }
  0x3b   : > { %p983_p10 = por %p982_p8, %p981_p7 }
  0x3c   : > { %p979_p6 = pneg %p978_p5 }
  0x3e   : > { %p984_p13 = pnand %p983_p10, %p979_p6 }
  0xb3   : > { %v412_v7 = vpop.f32.mrf.mxu0  ;;  %v438_v10 = vpop.f32.mrf.mxu1 }
  0xb4   : > { %v443_v8 = vsel %vm385_vm1, -1e+09, %v412_v7  ;;  %v444_v11 = vsel %vm385_vm1, -1e+09, %v438_v10 }
  0xb5   : > { %v446_v9 = vsel %vm445_vm2, %v443_v8, -inf  ;;  %v449_v12 = vsel %vm445_vm2, %v444_v11, -inf }
  0xb6   : > { %447 = vmax.xlane.f32.xlu0 %v446_v9 }
  0xbe   : > { %450 = vmax.xlane.f32.xlu0 %v449_v12 }
 0x129   : > { %v448_v13 = vpop.xlane.xlu0 %447 }
 0x12a   : > { %v452_v14 = vsub.f32 %v443_v8, %v448_v13 }
 0x12c   : > { %v454_v15 = vmul.f32 1.442695, %v452_v14 }
 0x12e   : > { %862 = vpow2.f32 %v454_v15 }
 0x131   : > { %v451_v16 = vpop.xlane.xlu0 %450 }
 0x132   : > { %v453_v17 = vsub.f32 %v444_v11, %v451_v16 }
 0x134   : > { %v863_v18 = vpop.eup %862  ;;  %v456_v19 = vmul.f32 1.442695, %v453_v17 }
 0x135   : > { %v458_v20 = vsel %vm445_vm2, %v863_v18, 0.0 }
 0x136   : > { %864 = vpow2.f32 %v456_v19  ;;  %459 = vadd.xlane.f32.xlu1 %v458_v20 }
 0x13c   : > { %v865_v21 = vpop.eup %864 }
 0x13d   : > { %v461_v22 = vsel %vm445_vm2, %v865_v21, 0.0 }
 0x13e   : > { %462 = vadd.xlane.f32.xlu1 %v461_v22 }
 0x1a9   : > { %v460_v25 = vpop.xlane.xlu1 %459 }
 0x1aa   : > { %866 = vrcp.f32 %v460_v25 }
 0x1b0   : > { %v867_v26 = vpop.eup %866 }
 0x1b1   : > { %v466_v27 = vmul.f32 %v867_v26, %v460_v25  ;;  %v463_v28 = vpop.xlane.xlu1 %462 }
 0x1b2   : > { %868 = vrcp.f32 %v463_v28 }
 0x1b3   : > { %v468_v29 = vsub.f32 2.0, %v466_v27 }
 0x1b5   : > { %v470_v30 = vmul.f32 %v867_v26, %v468_v29 }
 0x1b7   : > { %v472_v31 = vmul.f32 %v863_v18, %v470_v30 }
 0x1b8   : > { %v869_v32 = vpop.eup %868 }
 0x1b9   : > { %v467_v33 = vmul.f32 %v869_v32, %v463_v28  ;;  %766 = vmatmul.msk.f32.vlgmr.msra.gmra.mxu2 %vm445_vm2, %v472_v31  ;;  %520 = vst.msk [vmem:[%s368_s8] sm:$0xff] %vm445_vm2, %v472_v31 }
 0x1bb   : > { %v469_v34 = vsub.f32 2.0, %v467_v33 }
 0x1bd   : > { %v471_v35 = vmul.f32 %v869_v32, %v469_v34 }
 0x1bf   : > { %v473_v36 = vmul.f32 %v865_v21, %v471_v35 }
 0x1c1   : > { %767 = vmatmul.msk.f32.vlgmr.msra.gmra.mxu3 %vm445_vm2, %v473_v36  ;;  %521 = vst.msk [vmem:[%s368_s8 + $0x8] sm:$0xff] %vm445_vm2, %v473_v36 }
 0x1c2   : > { %987 = shalt.err (!%p984_p13)
}
 0x1c3   : > { %s1082_s20 = smov 128   ;;  %s1083_s18 = smov 8  }
 0x1c4   : > { %788 = dma.vmem_to_hbm [thread:$0]  (%p1169_p9), %s562_s11, 256, %s564_s14, %s530_s15, %s1082_s20, %s1082_s20, %s1083_s18  }
 0x1c5   : > { %s361_s22 = scalar_lea.vmem [#allocation8], %s1223_s7  ;;  %s542_s26 = scalar_lea.hbm %s1319_s4, %s779_s10 }
 0x1c6   : > { %s543_s30 = sshll.u32 %s361_s22, 4  ;;  %s545_s8 = sshll.u32 %s542_s26, 4  ;;  %s544_s30 = int_to_ptr.vmem [resolvable:$true] %s543_s30  ;;  %s546_s8 = int_to_ptr.hbm [resolvable:$true] %s545_s8 }
 0x1c7   : > { %s525_s12 = scalar_lea.sflag [#allocation4], %s1220_s1  ;;  %s1002_s29 = sshra.s32 %s546_s8, 4  ;;  %s1003_s29 = int_to_ptr.hbm [resolvable:$true] %s1002_s29 }
 0x1c8   : > { %s1004_s11 = scalar_lea.hbm %s1003_s29, 16  ;;  %s1008_s14 = scalar_lea.hbm %s1319_s4, 32 }
 0x1c9   : > { %p1005_p0 = scmp.ne.s32.totalorder %s1003_s29, %s1004_s11  ;;  %p1009_p3 = scmp.lt.s32.totalorder %s1003_s29, %s1319_s4 }
 0x1ca   : > { %p1010_p4 = scmp.lt.s32.totalorder %s1008_s14, %s1004_s11 }
 0x1cb   : > { %p1006_p1 = pnand %p1005_p0, %p1169_p9 }
 0x1cc   : > { %p1011_p5 = por %p1010_p4, %p1009_p3 }
 0x1cd   : > { %p1007_p2 = pneg %p1006_p1 }
 0x1cf   : > { %p1012_p6 = pnand %p1011_p5, %p1007_p2 }
 0x23c   : > { %v494_v37 = vpop.f32.mrf.mxu2 }
 0x23d   : > { %522 = vst.msk [vmem:[%s361_s22] sm:$0xff] %vm388_vm0, %v494_v37 }
 0x244   : > { %v517_v38 = vpop.f32.mrf.mxu3 }
 0x245   : > { %523 = vst.msk [vmem:[%s361_s22 + $0x8] sm:$0xff] %vm388_vm0, %v517_v38 }
 0x246   : > { %1015 = shalt.err (!%p1012_p6)
}
 0x247   : > { %787 = dma.vmem_to_hbm [thread:$0]  (%p1169_p9), %s544_s30, 256, %s546_s8, %s525_s12, %s1082_s20, %s1082_s20, %s1083_s18  }
 0x248 PF: > { %s1343_s1 = sld [smem:[#allocation15_spill]]  ;;  %p802_p7 = pnand %p746_p12, %p1176_p11 }
 0x249   : > { %s1345_s25 = sld [smem:[#allocation18_spill]] }
 0x24a   : > { %p803_p8 = pneg %p802_p7 }
 0x24e   : > { %s578_s13 = sand.u32 1, %s1343_s1  }
 0x24f   : > { %s579_s17 = scalar_lea.sflag [#allocation4], %s578_s13 }
 0x250   : > { %1049 = dma.done.wait (%p803_p8), %s579_s17, 256  }
 0x251   : > { %1051 = vsyncadd (%p803_p8), %s579_s17, 4294967040  ;;  %s589_s21 = scalar_lea.sflag [#allocation10], %s578_s13 }
 0x252   : > { %1053 = dma.done.wait (%p803_p8), %s589_s21, 256  }
 0x253   : > { %1055 = vsyncadd (%p803_p8), %s589_s21, 4294967040  ;;  %s28_s23 = sadd.s32 1, %s1345_s25   ;;  %s1346_s6 = sld [smem:[#allocation16_spill]] }
 0x254   : > { %p25_p10 = scmp.ge.s32.totalorder %s28_s23, 4   ;;  %s1347_s20 = sld [smem:[#allocation20_spill]] }
 0x255   : > { %s1348_s21 = sld [smem:[#allocation17_spill]]  ;;  %s1350_s18 = smov %s1062_s19 }
 0x256   : > { %s1349_s22 = sld [smem:[#allocation19_spill]]  ;;  %27 = sbr.rel (!%p25_p10) target bundleno = 12 (0xc), region = 125 }
 0x259   : > { %s1351_s19 = smov %s1346_s6 }
 0x25b   :  { %595 = vsyncpa [#allocation3], 1 }
 0x25c   :  { %597 = vsyncpa [#allocation3 + $0x1], 1 }
 0x25d   :  { %598 = vsyncpa [#allocation6], 1 }
 0x25e   :  { %600 = vsyncpa [#allocation6 + $0x1], 1 }
 0x25f   :  { %601 = vsyncpa [#allocation4], 1 }
 0x260   :  { %603 = vsyncpa [#allocation4 + $0x1], 1 }
 0x261   :  { %604 = vsyncpa [#allocation10], 1 }
 0x262   :  { %606 = vsyncpa [#allocation10 + $0x1], 1 }

</bundles_post_ra>
